<compile_context>
chip_gen: v6e
topology: v6e:2x2x1
jax: 0.10.0
libtpu: 0.0.40
codegen_flags: <defaults>
</compile_context>

<pallas_src>
import functools

import jax
import jax.numpy as jnp
from jax import lax
from jax.experimental import pallas as pl
from jax.experimental.pallas import tpu as pltpu


def _partials_kernel(x_ref, t_ref, pos_ref, neg_ref, tsum_ref, *,
                     rows, tiles_per_chunk, needs_mask):
    # x_ref : (tr, 128) block of the interleaved input  [x0, x1, x0, x1, ...]
    # t_ref : (tr, 64)  block of the un-repeated target (one value per sample)
    # pos/neg/tsum_ref : (8, 128) f32 per-chunk partial-sum accumulators (revisited
    #                    output blocks across the "arbitrary" grid axis j).
    tr = x_ref.shape[0]
    j = pl.program_id(1)

    @pl.when(j == 0)
    def _init():
        pos_ref[...] = jnp.zeros_like(pos_ref)
        neg_ref[...] = jnp.zeros_like(neg_ref)
        tsum_ref[...] = jnp.zeros_like(tsum_ref)

    x = x_ref[...].astype(jnp.float32)      # native-dtype load, upcast on the VPU
    t64 = t_ref[...].astype(jnp.float32)

    if needs_mask:
        # Partial last block / duplicated (clamped) block slots: zero invalid rows.
        # jnp.where (select) is used instead of a multiply so stale VMEM NaN/Inf
        # garbage in the out-of-range rows cannot leak into the sums.
        step = pl.program_id(0) * tiles_per_chunk + j
        rid = lax.broadcasted_iota(jnp.int32, (tr, 1), 0) + step * tr
        valid = rid < rows
        x = jnp.where(valid, x, 0.0)
        t64 = jnp.where(valid, t64, 0.0)

    # Expand target to x's interleaved lane layout on the (idle) MXU:
    #   E[j, 2j] = E[j, 2j+1] = 1   =>   (t64 @ E)[r, p] = t64[r, p // 2]   (exact).
    rr = lax.broadcasted_iota(jnp.int32, (64, 128), 0)
    ll = lax.broadcasted_iota(jnp.int32, (64, 128), 1)
    expand = (rr == (ll >> 1)).astype(jnp.float32)
    t = jnp.dot(t64, expand, preferred_element_type=jnp.float32)    # (tr, 128)

    # Column 0 sits on even lanes, column 1 on odd lanes.
    even = (lax.broadcasted_iota(jnp.int32, (1, 128), 1) & 1) == 0

    sel_pos = jnp.where(even, 1.0 - t, t)   # even: 1-t (pairs x0), odd: t (pairs x1)
    sel_neg = 1.0 - sel_pos                 # even: t,              odd: 1-t

    prod_pos = x * sel_pos                  # -> s0_nt on even lanes, s1_t on odd lanes
    pn = x * sel_neg                        # -> (x0*t), (x1*(1-t))

    def fold(a):                            # (tr,128) -> (8,128): VPU sublane folds only;
        return a.reshape(tr // 8, 8, 128).sum(axis=0)   # cross-lane reduce stays in JAX.

    pos_ref[...] += fold(prod_pos)
    neg_ref[...] += fold(pn * pn)
    tsum_ref[...] += fold(t)                # target counted 2x (interleaved layout)


@functools.partial(jax.jit, static_argnames=("tile_rows",))
def my_loss_no_softmax(inp, target, *, tile_rows=4096):
    """inp: (N, 2) float array, target: (N,) array. Returns scalar f32 loss."""
    n = int(inp.shape[0])

    if target.dtype == jnp.bool_:
        target = target.astype(jnp.float32)

    # Only pad when N is not a multiple of 64 (the row-major (N,2) input cannot be
    # viewed as lane-dense (rows,128) tiles otherwise).  Zero padding is exact:
    # padded x contributes 0 to every product sum, padded target contributes 0 to
    # sum(t), and sum(1-t) is reconstructed as N - sum(t) with the true N.
    n_pad = (-n) % 64
    if n_pad:
        # NOTE: this copy pass only triggers for unaligned N; aligned N is zero-copy.
        inp = jnp.pad(inp, ((0, n_pad), (0, 0)))
        target = jnp.pad(target, (0, n_pad))
    n_padded = n + n_pad
    rows = n_padded // 64

    x2 = inp.reshape(rows, 128)       # layout-preserving view (no transpose, no copy)
    t2 = target.reshape(rows, 64)     # un-repeated target, one value per sample

    # Tile sizing: multiple of 8 (and of 16/32 for 2-/1-byte dtypes).
    mult = max(8,
               {4: 8, 2: 16, 1: 32}.get(inp.dtype.itemsize, 8),
               {4: 8, 2: 16, 1: 32}.get(target.dtype.itemsize, 8))
    rows_r = -(-rows // mult) * mult
    tr = max(mult, min(int(tile_rows), rows_r))
    tr = (tr // mult) * mult

    tiles_total = pl.cdiv(rows, tr)
    num_chunks = 2 if tiles_total >= 2 else 1    # sharded across the 2 TCs on v7x
    tpc = pl.cdiv(tiles_total, num_chunks)
    last_block = tiles_total - 1
    needs_mask = (num_chunks * tpc * tr) != rows

    def idx(c, j):
        # Clamp duplicated slots (when tiles don't split evenly) to a valid block;
        # their contribution is zeroed in-kernel via the row-validity mask.
        return (jnp.minimum(c * tpc + j, last_block), 0)

    kernel = functools.partial(_partials_kernel, rows=rows,
                               tiles_per_chunk=tpc, needs_mask=needs_mask)

    out_sds = jax.ShapeDtypeStruct((num_chunks * 8, 128), jnp.float32)
    acc_spec = pl.BlockSpec((8, 128), lambda c, j: (c, 0))

    pos_p, neg_p, t_p = pl.pallas_call(
        kernel,
        out_shape=(out_sds, out_sds, out_sds),
        grid_spec=pltpu.PrefetchScalarGridSpec(
            num_scalar_prefetch=0,
            grid=(num_chunks, tpc),
            in_specs=[
                pl.BlockSpec((tr, 128), idx),    # x, interleaved
                pl.BlockSpec((tr, 64), idx),     # target, un-repeated
            ],
            out_specs=(acc_spec, acc_spec, acc_spec),
        ),
        compiler_params=pltpu.CompilerParams(
            dimension_semantics=("parallel", "arbitrary"),
        ),
        cost_estimate=pl.CostEstimate(
            flops=12 * rows * 128,
            transcendentals=0,
            bytes_accessed=(x2.size * x2.dtype.itemsize
                            + t2.size * t2.dtype.itemsize
                            + 3 * num_chunks * 8 * 128 * 4),
        ),
    )(x2, t2)

    # Tiny (few-KiB) per-chunk partials -> scalar epilogue in plain JAX (as recommended,
    # so the heavy reduction can be split across v7x's TensorCores).
    s0_nt = jnp.sum(pos_p[:, 0::2])          # sum(input[:,0] * (1 - target))
    s1_t = jnp.sum(pos_p[:, 1::2])           # sum(input[:,1] * target)
    neg_sum = jnp.sum(neg_p)                 # sum((x0*t)^2) + sum((x1*(1-t))^2)
    s_t = 0.5 * jnp.sum(t_p)                 # target accumulated in 2x interleaved layout
    s_nt = jnp.float32(n) - s_t              # sum(1 - target), true N, no extra reduce

    pos1 = s_nt / s0_nt - 1.0
    pos2 = s_t / s1_t - 1.0
    pos_loss = 0.5 * (pos1 + pos2)
    neg_loss = 0.5 * neg_sum
    neg_loss = jax.nn.sigmoid(jnp.log(jnp.log(neg_loss + 1.0) + 1.0) + 1.0)
    pos_loss = jax.nn.sigmoid(pos_loss)
    return 0.5 * (pos_loss + neg_loss)


def _reference(inp, target):
    inp = inp.astype(jnp.float32)
    target = target.astype(jnp.float32)
    neg_target = 1.0 - target
    pos1 = 1.0 / (jnp.sum(inp[:, 0] * neg_target) / jnp.sum(neg_target)) - 1.0
    pos2 = 1.0 / (jnp.sum(inp[:, 1] * target) / jnp.sum(target)) - 1.0
    pos_loss = (pos1 + pos2) / 2.0
    neg_loss = (jnp.sum((inp[:, 0] * target) ** 2)
                + jnp.sum((inp[:, 1] * neg_target) ** 2)) / 2.0
    neg_loss = jax.nn.sigmoid(jnp.log(jnp.log(neg_loss + 1.0) + 1.0) + 1.0)
    pos_loss = jax.nn.sigmoid(pos_loss)
    return (pos_loss + neg_loss) / 2.0


if __name__ == "__main__":
    key = jax.random.PRNGKey(0)
    k1, k2, k3, k4, k5, k6 = jax.random.split(key, 6)

    # Case 1: aligned N, tiny tile -> grid (2, 4): exercises the parallel chunk split,
    # the accumulate-across-j revisited outputs, and the init pl.when branch.
    n1 = 4096
    inp1 = jax.random.uniform(k1, (n1, 2), dtype=jnp.float32, minval=0.05, maxval=0.95)
    tgt1 = jax.random.bernoulli(k2, p=0.5, shape=(n1,)).astype(jnp.float32)
    loss1 = jax.block_until_ready(my_loss_no_softmax(inp1, tgt1, tile_rows=8))
    ref1 = jax.block_until_ready(_reference(inp1, tgt1))
    assert jnp.isfinite(loss1), "non-finite loss (case 1)"
    assert jnp.allclose(loss1, ref1, rtol=1e-5, atol=1e-5), (loss1, ref1)

    # Case 2: unaligned N -> pad-to-64 fallback + in-kernel masking of the partial block.
    n2 = 300
    inp2 = jax.random.uniform(k3, (n2, 2), dtype=jnp.float32, minval=0.05, maxval=0.95)
    tgt2 = jax.random.bernoulli(k4, p=0.5, shape=(n2,)).astype(jnp.float32)
    loss2 = jax.block_until_ready(my_loss_no_softmax(inp2, tgt2))
    ref2 = jax.block_until_ready(_reference(inp2, tgt2))
    assert jnp.isfinite(loss2), "non-finite loss (case 2)"
    assert jnp.allclose(loss2, ref2, rtol=1e-5, atol=1e-5), (loss2, ref2)

    # Case 3: aligned N with the default tile -> single full block, no masking, no pad.
    n3 = 1024
    inp3 = jax.random.uniform(k5, (n3, 2), dtype=jnp.float32, minval=0.05, maxval=0.95)
    tgt3 = jax.random.bernoulli(k6, p=0.5, shape=(n3,)).astype(jnp.float32)
    loss3 = jax.block_until_ready(my_loss_no_softmax(inp3, tgt3))
    ref3 = jax.block_until_ready(_reference(inp3, tgt3))
    assert jnp.isfinite(loss3), "non-finite loss (case 3)"
    assert jnp.allclose(loss3, ref3, rtol=1e-5, atol=1e-5), (loss3, ref3)

    print("KERNEL_OK")
</pallas_src>

<mosaic_0001>
module attributes {stable_mosaic.version = 11 : i64} {
  func.func @_partials_kernel(%arg0: i32, %arg1: i32, %arg2: memref<8x128xf32, #tpu.memory_space<vmem>>, %arg3: memref<8x64xf32, #tpu.memory_space<vmem>>, %arg4: memref<8x128xf32, #tpu.memory_space<vmem>>, %arg5: memref<8x128xf32, #tpu.memory_space<vmem>>, %arg6: memref<8x128xf32, #tpu.memory_space<vmem>>) attributes {dimension_semantics = [#tpu.dimension_semantics<parallel>, #tpu.dimension_semantics<arbitrary>], iteration_bounds = array<i64: 2, 4>, scalar_prefetch = 0 : i64, scratch_operands = 0 : i64, tpu.core_type = #tpu.core_type<tc>, window_params = [{transform_indices = @transform_0, window_bounds = array<i64: 8, 128>}, {transform_indices = @transform_1, window_bounds = array<i64: 8, 64>}, {transform_indices = @transform_2, window_bounds = array<i64: 8, 128>}, {transform_indices = @transform_3, window_bounds = array<i64: 8, 128>}, {transform_indices = @transform_4, window_bounds = array<i64: 8, 128>}]} {
    %c0_i32 = arith.constant 0 : i32
    %0 = arith.cmpi eq, %arg1, %c0_i32 : i32
    %1 = arith.extui %0 : i1 to i32
    %c0_i32_0 = arith.constant 0 : i32
    %2 = arith.cmpi ne, %1, %c0_i32_0 : i32
    scf.if %2 {
      %cst_23 = arith.constant 0.000000e+00 : f32
      %43 = vector.broadcast %cst_23 : f32 to vector<8x128xf32>
      %c0_24 = arith.constant 0 : index
      %c0_25 = arith.constant 0 : index
      %44 = vector.load %arg4[%c0_24, %c0_25] : memref<8x128xf32, #tpu.memory_space<vmem>>, vector<8x128xf32>
      tpu.vector_store %arg4[%c0_24, %c0_25], %43 {strides = array<i32>} : memref<8x128xf32, #tpu.memory_space<vmem>>, vector<8x128xf32>,
      %cst_26 = arith.constant 0.000000e+00 : f32
      %45 = vector.broadcast %cst_26 : f32 to vector<8x128xf32>
      %c0_27 = arith.constant 0 : index
      %c0_28 = arith.constant 0 : index
      %46 = vector.load %arg5[%c0_27, %c0_28] : memref<8x128xf32, #tpu.memory_space<vmem>>, vector<8x128xf32>
      tpu.vector_store %arg5[%c0_27, %c0_28], %45 {strides = array<i32>} : memref<8x128xf32, #tpu.memory_space<vmem>>, vector<8x128xf32>,
      %cst_29 = arith.constant 0.000000e+00 : f32
      %47 = vector.broadcast %cst_29 : f32 to vector<8x128xf32>
      %c0_30 = arith.constant 0 : index
      %c0_31 = arith.constant 0 : index
      %48 = vector.load %arg6[%c0_30, %c0_31] : memref<8x128xf32, #tpu.memory_space<vmem>>, vector<8x128xf32>
      tpu.vector_store %arg6[%c0_30, %c0_31], %47 {strides = array<i32>} : memref<8x128xf32, #tpu.memory_space<vmem>>, vector<8x128xf32>,
    } else {
    }
    %c0 = arith.constant 0 : index
    %c0_1 = arith.constant 0 : index
    %3 = vector.load %arg2[%c0, %c0_1] : memref<8x128xf32, #tpu.memory_space<vmem>>, vector<8x128xf32>
    %c0_2 = arith.constant 0 : index
    %c0_3 = arith.constant 0 : index
    %4 = vector.load %arg3[%c0_2, %c0_3] : memref<8x64xf32, #tpu.memory_space<vmem>>, vector<8x64xf32>
    %5 = tpu.iota {dimensions = array<i32: 0>} : vector<64x128xi32>
    %6 = tpu.iota {dimensions = array<i32: 1>} : vector<64x128xi32>
    %c1_i32 = arith.constant 1 : i32
    %7 = vector.broadcast %c1_i32 : i32 to vector<64x128xi32>
    %8 = arith.shrsi %6, %7 : vector<64x128xi32>
    %9 = arith.cmpi eq, %5, %8 : vector<64x128xi32>
    %10 = arith.extui %9 : vector<64x128xi1> to vector<64x128xi32>
    %11 = arith.sitofp %10 : vector<64x128xi32> to vector<64x128xf32>
    %cst = arith.constant dense<0.000000e+00> : vector<8x128xf32>
    %12 = tpu.matmul %4, %11, %cst {dimension_numbers = #tpu.dot_dimension_numbers<[1], [0], [0], [1], [0, 0, 1, 1], [], []>} : vector<8x64xf32>, vector<64x128xf32>, vector<8x128xf32> -> vector<8x128xf32>
    %13 = tpu.iota {dimensions = array<i32: 1>} : vector<1x128xi32>
    %c1_i32_4 = arith.constant 1 : i32
    %14 = vector.broadcast %c1_i32_4 : i32 to vector<1x128xi32>
    %15 = arith.andi %13, %14 : vector<1x128xi32>
    %c0_i32_5 = arith.constant 0 : i32
    %16 = vector.broadcast %c0_i32_5 : i32 to vector<1x128xi32>
    %17 = arith.cmpi eq, %15, %16 : vector<1x128xi32>
    %cst_6 = arith.constant 1.000000e+00 : f32
    %18 = vector.broadcast %cst_6 : f32 to vector<8x128xf32>
    %19 = arith.subf %18, %12 : vector<8x128xf32>
    %20 = vector.shape_cast %17 : vector<1x128xi1> to vector<1x128xi1>
    %21 = vector.broadcast %20 : vector<1x128xi1> to vector<8x128xi1>
    %22 = arith.select %21, %19, %12 : vector<8x128xi1>, vector<8x128xf32>
    %cst_7 = arith.constant 1.000000e+00 : f32
    %23 = vector.broadcast %cst_7 : f32 to vector<8x128xf32>
    %24 = arith.subf %23, %22 : vector<8x128xf32>
    %25 = arith.mulf %3, %22 : vector<8x128xf32>
    %26 = arith.mulf %3, %24 : vector<8x128xf32>
    %c0_8 = arith.constant 0 : index
    %c0_9 = arith.constant 0 : index
    %27 = vector.load %arg4[%c0_8, %c0_9] : memref<8x128xf32, #tpu.memory_space<vmem>>, vector<8x128xf32>
    %28 = vector.shape_cast %25 : vector<8x128xf32> to vector<1x8x128xf32>
    %cst_10 = arith.constant dense<0.000000e+00> : vector<8x128xf32>
    %29 = vector.multi_reduction <add>, %28, %cst_10 [0] : vector<1x8x128xf32> to vector<8x128xf32>
    %30 = arith.addf %27, %29 : vector<8x128xf32>
    %c0_11 = arith.constant 0 : index
    %c0_12 = arith.constant 0 : index
    %31 = vector.load %arg4[%c0_11, %c0_12] : memref<8x128xf32, #tpu.memory_space<vmem>>, vector<8x128xf32>
    tpu.vector_store %arg4[%c0_11, %c0_12], %30 {strides = array<i32>} : memref<8x128xf32, #tpu.memory_space<vmem>>, vector<8x128xf32>,
    %c0_13 = arith.constant 0 : index
    %c0_14 = arith.constant 0 : index
    %32 = vector.load %arg5[%c0_13, %c0_14] : memref<8x128xf32, #tpu.memory_space<vmem>>, vector<8x128xf32>
    %33 = arith.mulf %26, %26 : vector<8x128xf32>
    %34 = vector.shape_cast %33 : vector<8x128xf32> to vector<1x8x128xf32>
    %cst_15 = arith.constant dense<0.000000e+00> : vector<8x128xf32>
    %35 = vector.multi_reduction <add>, %34, %cst_15 [0] : vector<1x8x128xf32> to vector<8x128xf32>
    %36 = arith.addf %32, %35 : vector<8x128xf32>
    %c0_16 = arith.constant 0 : index
    %c0_17 = arith.constant 0 : index
    %37 = vector.load %arg5[%c0_16, %c0_17] : memref<8x128xf32, #tpu.memory_space<vmem>>, vector<8x128xf32>
    tpu.vector_store %arg5[%c0_16, %c0_17], %36 {strides = array<i32>} : memref<8x128xf32, #tpu.memory_space<vmem>>, vector<8x128xf32>,
    %c0_18 = arith.constant 0 : index
    %c0_19 = arith.constant 0 : index
    %38 = vector.load %arg6[%c0_18, %c0_19] : memref<8x128xf32, #tpu.memory_space<vmem>>, vector<8x128xf32>
    %39 = vector.shape_cast %12 : vector<8x128xf32> to vector<1x8x128xf32>
    %cst_20 = arith.constant dense<0.000000e+00> : vector<8x128xf32>
    %40 = vector.multi_reduction <add>, %39, %cst_20 [0] : vector<1x8x128xf32> to vector<8x128xf32>
    %41 = arith.addf %38, %40 : vector<8x128xf32>
    %c0_21 = arith.constant 0 : index
    %c0_22 = arith.constant 0 : index
    %42 = vector.load %arg6[%c0_21, %c0_22] : memref<8x128xf32, #tpu.memory_space<vmem>>, vector<8x128xf32>
    tpu.vector_store %arg6[%c0_21, %c0_22], %41 {strides = array<i32>} : memref<8x128xf32, #tpu.memory_space<vmem>>, vector<8x128xf32>,
    return
  }
  func.func @transform_0(%arg0: i32, %arg1: i32) -> (i32, i32) {
    %c4_i32 = arith.constant 4 : i32
    %0 = arith.muli %arg0, %c4_i32 : i32
    %1 = arith.addi %0, %arg1 : i32
    %c7_i32 = arith.constant 7 : i32
    %2 = arith.minsi %1, %c7_i32 : i32
    %c0_i32 = arith.constant 0 : i32
    %c0_i32_0 = arith.constant 0 : i32
    return %2, %c0_i32 : i32, i32
  }
  func.func @transform_1(%arg0: i32, %arg1: i32) -> (i32, i32) {
    %c4_i32 = arith.constant 4 : i32
    %0 = arith.muli %arg0, %c4_i32 : i32
    %1 = arith.addi %0, %arg1 : i32
    %c7_i32 = arith.constant 7 : i32
    %2 = arith.minsi %1, %c7_i32 : i32
    %c0_i32 = arith.constant 0 : i32
    %c0_i32_0 = arith.constant 0 : i32
    return %2, %c0_i32 : i32, i32
  }
  func.func @transform_2(%arg0: i32, %arg1: i32) -> (i32, i32) {
    %c0_i32 = arith.constant 0 : i32
    %c0_i32_0 = arith.constant 0 : i32
    return %arg0, %c0_i32 : i32, i32
  }
  func.func @transform_3(%arg0: i32, %arg1: i32) -> (i32, i32) {
    %c0_i32 = arith.constant 0 : i32
    %c0_i32_0 = arith.constant 0 : i32
    return %arg0, %c0_i32 : i32, i32
  }
  func.func @transform_4(%arg0: i32, %arg1: i32) -> (i32, i32) {
    %c0_i32 = arith.constant 0 : i32
    %c0_i32_0 = arith.constant 0 : i32
    return %arg0, %c0_i32 : i32, i32
  }
}

</mosaic_0001>

<bundles_post_ra>
// kernel: my_loss_no_softmax.1
= control target key start
LH: loop header
LB: loop body
LE: loop exit
PB: predicated region body
PF: predicated region fallthrough
CT: control target
= control target key end

     0   :  { %s761_s15 = smov 0   ;;  %s763_s16 = smov 0   ;;  %s846_s0 = inlined_call_operand.vmem [shape: f32[64,128], index: 0, kind: input, shape index: {}]   ;;  %s847_s1 = inlined_call_operand.vmem [shape: f32[64,64], index: 1, kind: input, shape index: {}]   ;;  %s848_s2 = inlined_call_operand.vmem [shape: f32[16,128], index: 2, kind: output, shape index: {0}]   ;;  %s849_s3 = inlined_call_operand.vmem [shape: f32[16,128], index: 3, kind: output, shape index: {1}]   ;;  %s850_s4 = inlined_call_operand.vmem [shape: f32[16,128], index: 4, kind: output, shape index: {2}]  }
   0x1   :  { %s765_s17 = smov 0   ;;  %s767_s18 = smov 0  }
   0x2   :  { %s769_s19 = smov 0  }
   0x3 LB: > { %s24_s20 = sadd.s32 1, %s722_s17  ;;  %s27_s21 = sadd.s32 1, %s726_s18  ;;  %s730_s19 = sphi %s769_s19, %s15_s19   ;;  %s726_s18 = sphi %s767_s18, %s854_s18   ;;  %s722_s17 = sphi %s765_s17, %s853_s17   ;;  %s718_s16 = sphi %s763_s16, %s852_s16   ;;  %s714_s15 = sphi %s761_s15, %s851_s15  }
   0x4   : > { %p25_p0 = scmp.ge.s32.totalorder %s24_s20, 4  ;;  %p586_p1 = scmp.ge.s32.totalorder %s730_s19, 1 }
   0x5   : > { %p219_p2 = scmp.lt.s32.totalorder %s730_s19, 9 }
   0x6   : > { %s856_s20 = smov (%p25_p0, %s24_s20), 0  ;;  %s858_s21 = smov (!%p25_p0, %s27_s21), %s726_s18 }
   0x7   : > { %p220_p3 = pnand %p586_p1, %p219_p2  ;;  %p29_p4 = scmp.ge.s32.totalorder %s858_s21, 2 }
   0x8   : > { %s587_s22 = sshll.u32 (!%p220_p3), %s718_s16, 2  ;;  %p287_p5 = scmp.lt.s32.totalorder (!%p220_p3), %s718_s16, 1 }
   0x9   : > { %s860_s21 = smov (%p29_p4, %s858_s21), 0  ;;  %223 = sbr.rel (%p220_p3) target bundleno = 254 (0xfe), region = 28 }
   0xa   : > { %s264_s23 = sadd.s32 (!%p220_p3), %s714_s15, %s587_s22  ;;  %p600_p7 = scmp.ne.s32.totalorder (!%p220_p3), %s714_s15, 0 }
   0xb   : > { %p265_p6 = scmp.lt.s32.totalorder (!%p220_p3), %s264_s23, 7 }
   0xe   : > { %s862_s16 = smov (!%p287_p5, %s718_s16), 1  ;;  %s864_s23 = smov (!%p265_p6, %s264_s23), 7 }
   0xf   : > { %s597_s24 = sshll.u32 %s862_s16, 3  ;;  %s866_s23 = smov (!%p265_p6, %s864_s23), 7 }
  0x10   : > { %s797_s27 = scalar_lea.vmem %s848_s2, %s597_s24  ;;  %s802_s30 = scalar_lea.vmem %s849_s3, %s597_s24 }
  0x11   : > { %s591_s5 = sshll.u32 %s866_s23, 3  ;;  %s807_s8 = scalar_lea.vmem %s850_s4, %s597_s24 }
  0x12   : > { %s812_s11 = scalar_lea.vmem %s846_s0, %s591_s5  ;;  %s817_s14 = scalar_lea.vmem %s847_s1, %s591_s5 }
  0x13   : > { %302 = sbr.rel (%p600_p7) target bundleno = 27 (0x1b), region = 32 }
  0x18   : > { %v732_v0 = vmov 0.0  }
  0x19   : > { %303 = vst [vmem:[%s797_s27] sm:$0xff] %v732_v0  ;;  %304 = vst [vmem:[%s802_s30] sm:$0xff] %v732_v0 }
  0x1a   : > { %305 = vst [vmem:[%s807_s8] sm:$0xff] %v732_v0 }
  0x1b PF: > { %v308_v1 = vlaneseq  ;;  %v733_v2 = vmov 0.0   ;;  %vm734_vm0 = vmmov 0   ;;  %v735_v10 = vmov 1.0   ;;  %v307_v14 = vld [vmem:[%s817_s14] sm:$0xff] }
  0x1c   : > { %629 = vmatprep.subr.mxu0 %v733_v2  ;;  %645 = vmatprep.mubr.msk.f32.mxu0 %vm734_vm0, %v733_v2  ;;  %vm344_vm9 = vcmask 523264   ;;  %v306_v18 = vld [vmem:[%s812_s11] sm:$0xff] }
  0x1d   : > { %v309_v3 = vshrl.u32 %v308_v1, 7  ;;  %v318_v4 = vand.u32 127, %v308_v1 }
  0x1f   : > { %v316_v5 = vadd.s32 56, %v309_v3  ;;  %v319_v6 = vshra.s32 %v318_v4, 1  ;;  %v315_v7 = vadd.s32 48, %v309_v3  ;;  %v314_v8 = vadd.s32 40, %v309_v3 }
  0x20   : > { %v313_v9 = vadd.s32 32, %v309_v3  ;;  %v312_v11 = vadd.s32 24, %v309_v3  ;;  %v311_v12 = vadd.s32 16, %v309_v3  ;;  %v310_v13 = vadd.s32 8, %v309_v3  ;;  %v427_v23 = vld [vmem:[%s797_s27] sm:$0xff] }
  0x21   : > { %vm327_vm1 = vcmp.eq.s32.totalorder %v316_v5, %v319_v6  ;;  %vm326_vm2 = vcmp.eq.s32.totalorder %v315_v7, %v319_v6  ;;  %vm325_vm3 = vcmp.eq.s32.totalorder %v314_v8, %v319_v6  ;;  %vm320_vm8 = vcmp.eq.s32.totalorder %v309_v3, %v319_v6  ;;  %v436_v16 = vld [vmem:[%s807_s8] sm:$0xff] }
  0x22   : > { %630 = vmatpush3.msk.msra.mxu0 %vm327_vm1, %v735_v10  ;;  %vm324_vm4 = vcmp.eq.s32.totalorder %v313_v9, %v319_v6  ;;  %vm323_vm5 = vcmp.eq.s32.totalorder %v312_v11, %v319_v6  ;;  %vm322_vm6 = vcmp.eq.s32.totalorder %v311_v12, %v319_v6  ;;  %vm321_vm7 = vcmp.eq.s32.totalorder %v310_v13, %v319_v6  ;;  %v431_v28 = vld [vmem:[%s802_s30] sm:$0xff] }
  0x23   : > { %631 = vmatprep.subr.mxu0 %v733_v2  ;;  %v418_v15 = vand.u32 1, %v318_v4 }
  0x24   : > { %632 = vmatpush3.msk.msra.mxu0 %vm326_vm2, %v735_v10 }
  0x25   : > { %633 = vmatprep.subr.mxu0 %v733_v2  ;;  %vm419_vm10 = vcmp.eq.s32.totalorder %v418_v15, 0 }
  0x26   : > { %634 = vmatpush3.msk.msra.mxu0 %vm325_vm3, %v735_v10 }
  0x27   : > { %635 = vmatprep.subr.mxu0 %v733_v2 }
  0x28   : > { %636 = vmatpush3.msk.msra.mxu0 %vm324_vm4, %v735_v10 }
  0x29   : > { %637 = vmatprep.subr.mxu0 %v733_v2 }
  0x2a   : > { %638 = vmatpush3.msk.msra.mxu0 %vm323_vm5, %v735_v10 }
  0x2b   : > { %639 = vmatprep.subr.mxu0 %v733_v2 }
  0x2c   : > { %640 = vmatpush3.msk.msra.mxu0 %vm322_vm6, %v735_v10 }
  0x2d   : > { %641 = vmatprep.subr.mxu0 %v733_v2 }
  0x2e   : > { %642 = vmatpush3.msk.msra.mxu0 %vm321_vm7, %v735_v10 }
  0x2f   : > { %643 = vmatprep.subr.mxu0 %v733_v2 }
  0x30   : > { %644 = vmatpush3.msk.msra.mxu0 %vm320_vm8, %v735_v10 }
  0x31   : > { %646 = vmatmul.mubr.msk.f32.vlgmr.msra.gmra.mxu0 %vm344_vm9, %v307_v14 }
  0xf1   : > { %v414_v17 = vpop.f32.mrf.mxu0 }
  0xf2   : > { %v420_v19 = vsub.f32 1.0, %v414_v17  ;;  %v438_v20 = vadd.f32 %v436_v16, %v414_v17 }
  0xf3   : > { %v647_v21 = vpop.f32.mrf.mxu0 }
  0xf4   : > { %v423_v22 = vsel %vm419_vm10, %v420_v19, %v414_v17  ;;  %439 = vst [vmem:[%s807_s8] sm:$0xff] %v438_v20 }
  0xf5   : > { %v424_v24 = vsub.f32 1.0, %v423_v22  ;;  %v425_v25 = vmul.f32 %v423_v22, %v306_v18 }
  0xf7   : > { %v426_v26 = vmul.f32 %v424_v24, %v306_v18  ;;  %v429_v27 = vadd.f32 %v427_v23, %v425_v25 }
  0xf9   : > { %430 = vst [vmem:[%s797_s27] sm:$0xff] %v429_v27  ;;  %v432_v29 = vmul.f32 %v426_v26, %v426_v26 }
  0xfb   : > { %v434_v30 = vadd.f32 %v432_v29, %v431_v28 }
  0xfd   : > { %435 = vst [vmem:[%s802_s30] sm:$0xff] %v434_v30 }
  0xfe PF: > { %s15_s19 = sadd.s32 1, %s730_s19   ;;  %s851_s15 = smov %s722_s17 }
  0xff   : > { %p12_p8 = scmp.ge.s32.totalorder %s15_s19, 10   ;;  %s852_s16 = smov %s726_s18 }
 0x100   : > { %s853_s17 = smov %s856_s20  ;;  %s854_s18 = smov %s860_s21 }
 0x101   :  { %14 = sbr.rel (!%p12_p8) target bundleno = 3 (0x3), region = 89 }

</bundles_post_ra>
